<compile_context>
chip_gen: v7x
topology: tpu7x:2x2x1
jax: 0.10.0
libtpu: 0.0.40
codegen_flags: <defaults>
</compile_context>

<pallas_src>
import jax
import jax.numpy as jnp
from jax import lax
from jax.experimental import pallas as pl
from jax.experimental.pallas import tpu as pltpu

# ---------------------------------------------------------------- config ----
B, H, W = 2, 16, 16
CIN = 4
NUM_CLASSES = 5          # seg head channels
NUM_KPT = 3              # keypoint head channels (== heatmap channels)
NUM_LINE = 1             # line head channels
IGNORE_LABEL = 255
TASK = ("seg", "keypoint", "line")
SEG_EFFI, KEYPOINT_EFFI, LINE_EFFI = 1.0, 1.0, 1.0
AUTOWEIGHTLOSS = True

N = B * H * W                                # flattened pixels (lane axis)
CTOT = NUM_CLASSES + NUM_KPT + NUM_LINE      # combined head channels (sublane axis)


# ----------------------------------------------------- fused model + loss ---
def _fused_kernel(xT_ref, wT_ref, bT_ref, maskT_ref, hmT_ref, lineT_ref,
                  yT_ref, losses_ref):
    # ---- combined 1x1-conv heads: one small matmul on the MXU ----
    # (CTOT, CIN) @ (CIN, N) -> (CTOT, N); lane axis (N=512) is dense.
    # (On v6e a 4-term VPU broadcast mul-add would avoid the MXU round trip,
    #  but the single dot is already 3x fewer MXU pushes than 3 separate heads.)
    xT = xT_ref[...]                                           # (CIN, N)
    y = (jnp.dot(wT_ref[...], xT, preferred_element_type=jnp.float32)
         + bT_ref[...])                                        # (CTOT, N)
    yT_ref[...] = y                                            # unmasked lane-dense vst

    # ---- cross entropy with ignore_label (mean over valid pixels), (C, N) layout ----
    logits = y[:NUM_CLASSES, :]                                # (C, N)
    tgt = maskT_ref[...]                                       # (1, N) int32
    m = jnp.max(logits, axis=0, keepdims=True)                 # (1, N)
    lse = jnp.log(jnp.sum(jnp.exp(logits - m), axis=0, keepdims=True)) + m
    cls_ids = lax.broadcasted_iota(jnp.int32, logits.shape, 0)  # class id per sublane row
    onehot = cls_ids == tgt                                    # (C, N) vs (1, N) broadcast
    tgt_logit = jnp.sum(jnp.where(onehot, logits, 0.0), axis=0, keepdims=True)
    valid = (tgt != IGNORE_LABEL).astype(jnp.float32)          # (1, N)
    per_pix = (lse - tgt_logit) * valid
    n_valid = jnp.sum(valid)
    loss_seg = jnp.sum(per_pix) / jnp.maximum(n_valid, 1.0)

    # ---- MSE keypoint loss (mean reduction) ----
    dk = y[NUM_CLASSES:NUM_CLASSES + NUM_KPT, :] - hmT_ref[...]
    loss_kpt = jnp.sum(dk * dk) * (1.0 / float(NUM_KPT * N))

    # ---- MSE line loss (mean reduction) ----
    dl = y[NUM_CLASSES + NUM_KPT:, :] - lineT_ref[...]
    loss_line = jnp.sum(dl * dl) * (1.0 / float(NUM_LINE * N))

    losses_ref[0] = loss_seg
    losses_ref[1] = loss_kpt
    losses_ref[2] = loss_line


def fused_heads_and_losses(xT, wT, bT, maskT, hmT, lineT):
    """One pallas_call: head outputs (CTOT, N) in VMEM + 3 raw losses in SMEM."""
    vmem = pl.BlockSpec(memory_space=pltpu.MemorySpace.VMEM)
    smem = pl.BlockSpec(memory_space=pltpu.MemorySpace.SMEM)
    out_shapes = (
        jax.ShapeDtypeStruct((CTOT, N), jnp.float32),
        jax.ShapeDtypeStruct((3,), jnp.float32),
    )
    # NOTE: single program, no grid. Problem is ~30 KB; sharding across cores or
    # tuning vmem_limit_bytes would be pure overhead at this size. If B/H/W are
    # scaled up (H,W >= 128), add a grid over the pixel (lane) axis with tiles of
    # >= 512 rows and accumulate the three loss sums in scratch with pl.when.
    return pl.pallas_call(
        _fused_kernel,
        out_shape=out_shapes,
        in_specs=[vmem] * 6,
        out_specs=(vmem, smem),
    )(xT, wT, bT, maskT, hmT, lineT)


# ------------------------------------------------------------ FullModel -----
@jax.jit
def _full_model_core(inputs, masks, heatmaps, lines, params, awl_params):
    # Layout plumbing: flatten NHWC -> lane-dense transposed (C, N).
    xT = inputs.reshape(N, CIN).T                              # (CIN, N)
    maskT = masks.reshape(1, N).astype(jnp.int32)              # (1, N)
    hmT = heatmaps.reshape(N, NUM_KPT).T                       # (NUM_KPT, N)
    lineT = lines.reshape(N, NUM_LINE).T                       # (NUM_LINE, N)

    # Combine the three heads into one weight/bias (constant-folded under jit).
    wT = jnp.concatenate(
        [params["w_seg"].T, params["w_kpt"].T, params["w_line"].T], axis=0)  # (CTOT, CIN)
    bT = jnp.concatenate(
        [params["b_seg"], params["b_kpt"], params["b_line"]], axis=1).T      # (CTOT, 1)

    yT, raw_losses = fused_heads_and_losses(xT, wT, bT, maskT, hmT, lineT)

    # Split / un-transpose head outputs back to NHWC for the caller.
    seg_out = yT[:NUM_CLASSES].reshape(NUM_CLASSES, B, H, W).transpose(1, 2, 3, 0)
    kpt_out = (yT[NUM_CLASSES:NUM_CLASSES + NUM_KPT]
               .reshape(NUM_KPT, B, H, W).transpose(1, 2, 3, 0))
    line_out = (yT[NUM_CLASSES + NUM_KPT:]
                .reshape(NUM_LINE, B, H, W).transpose(1, 2, 3, 0))
    model_outputs = (seg_out, kpt_out, line_out)

    # AutomaticWeightedLoss(3): loss_i <- 0.5/p_i^2 * loss_i * effi_i + log(1 + p_i^2)
    # (tiny scalar math; fused by XLA under the same jit -> no extra dispatches)
    loss_effi0 = jnp.array([SEG_EFFI, KEYPOINT_EFFI, LINE_EFFI], jnp.float32)
    if AUTOWEIGHTLOSS:
        p2 = awl_params * awl_params
        half_inv = 0.5 / p2
        weighted = half_inv * raw_losses * loss_effi0 + jnp.log1p(p2)
        loss_effi = loss_effi0 * half_inv
    else:
        weighted = raw_losses
        loss_effi = loss_effi0

    loss_total = jnp.sum(weighted).reshape(1)                  # unsqueeze(loss_total, 0)
    return loss_total, model_outputs, raw_losses, loss_effi


def full_model_forward(inputs, labels, params, awl_params):
    masks, heatmaps, lines = labels
    loss_total, model_outputs, raw_losses, loss_effi = _full_model_core(
        inputs, masks, heatmaps, lines, params, awl_params)

    # loss_info values stay as device arrays (no float() -> no blocking host
    # sync, keeps the step fully jittable). Call .item() outside the hot loop
    # if host-side scalars are needed for logging.
    loss_info = {
        "loss_type": list(TASK),
        "loss_effi": loss_effi,     # (3,) f32 device array
        "loss_list": raw_losses,    # (3,) f32 device array (raw per-task losses)
    }
    # ENHANCE = [] -> seg_keypoint_enhace path skipped (see TODO at top)
    return loss_total, model_outputs, loss_info


# ------------------------------------------------------------------- main ---
if __name__ == "__main__":
    key = jax.random.PRNGKey(0)
    k_in, k_ws, k_wk, k_wl, k_mask, k_hm, k_ln = jax.random.split(key, 7)

    # inputs (NHWC)
    inputs = jax.random.normal(k_in, (B, H, W, CIN), jnp.float32)

    # labels
    masks = jax.random.randint(k_mask, (B, H, W), 0, NUM_CLASSES, jnp.int32)
    # sprinkle some ignore pixels deterministically
    masks = masks.at[:, 0, :].set(IGNORE_LABEL)
    heatmaps = jax.random.uniform(k_hm, (B, H, W, NUM_KPT), jnp.float32)
    lines = jax.random.uniform(k_ln, (B, H, W, NUM_LINE), jnp.float32)

    # deterministic synthetic model parameters (1x1-conv heads)
    params = {
        "w_seg": 0.1 * jax.random.normal(k_ws, (CIN, NUM_CLASSES), jnp.float32),
        "b_seg": jnp.zeros((1, NUM_CLASSES), jnp.float32),
        "w_kpt": 0.1 * jax.random.normal(k_wk, (CIN, NUM_KPT), jnp.float32),
        "b_kpt": jnp.zeros((1, NUM_KPT), jnp.float32),
        "w_line": 0.1 * jax.random.normal(k_wl, (CIN, NUM_LINE), jnp.float32),
        "b_line": jnp.zeros((1, NUM_LINE), jnp.float32),
    }
    awl_params = jnp.ones((len(TASK),), jnp.float32)  # AutomaticWeightedLoss params

    loss_total, model_outputs, loss_info = full_model_forward(
        inputs, (masks, heatmaps, lines), params, awl_params)

    jax.block_until_ready(loss_total)
    jax.block_until_ready(model_outputs)
    jax.block_until_ready(loss_info["loss_list"])
    assert loss_total.shape == (1,)
    assert model_outputs[0].shape == (B, H, W, NUM_CLASSES)
    assert model_outputs[1].shape == (B, H, W, NUM_KPT)
    assert model_outputs[2].shape == (B, H, W, NUM_LINE)
    print("KERNEL_OK")
</pallas_src>

<mosaic_0001>
module attributes {stable_mosaic.version = 11 : i64} {
  func.func @_fused_kernel(%arg0: memref<4x512xf32, #tpu.memory_space<vmem>>, %arg1: memref<9x4xf32, #tpu.memory_space<vmem>>, %arg2: memref<9x1xf32, #tpu.memory_space<vmem>>, %arg3: memref<1x512xi32, #tpu.memory_space<vmem>>, %arg4: memref<3x512xf32, #tpu.memory_space<vmem>>, %arg5: memref<1x512xf32, #tpu.memory_space<vmem>>, %arg6: memref<9x512xf32, #tpu.memory_space<vmem>>, %arg7: memref<3xf32, #tpu.memory_space<smem>>) attributes {dimension_semantics = [], scalar_prefetch = 0 : i64, scratch_operands = 0 : i64, tpu.core_type = #tpu.core_type<tc>} {
    %c0 = arith.constant 0 : index
    %c0_0 = arith.constant 0 : index
    %0 = vector.load %arg0[%c0, %c0_0] : memref<4x512xf32, #tpu.memory_space<vmem>>, vector<4x512xf32>
    %c0_1 = arith.constant 0 : index
    %c0_2 = arith.constant 0 : index
    %1 = vector.load %arg1[%c0_1, %c0_2] : memref<9x4xf32, #tpu.memory_space<vmem>>, vector<9x4xf32>
    %cst = arith.constant dense<0.000000e+00> : vector<9x512xf32>
    %2 = tpu.matmul %1, %0, %cst {dimension_numbers = #tpu.dot_dimension_numbers<[1], [0], [0], [1], [0, 0, 1, 1], [], []>} : vector<9x4xf32>, vector<4x512xf32>, vector<9x512xf32> -> vector<9x512xf32>
    %c0_3 = arith.constant 0 : index
    %c0_4 = arith.constant 0 : index
    %3 = vector.load %arg2[%c0_3, %c0_4] : memref<9x1xf32, #tpu.memory_space<vmem>>, vector<9x1xf32>
    %4 = vector.broadcast %3 : vector<9x1xf32> to vector<9x512xf32>
    %5 = arith.addf %2, %4 : vector<9x512xf32>
    %c0_5 = arith.constant 0 : index
    %c0_6 = arith.constant 0 : index
    %6 = vector.load %arg6[%c0_5, %c0_6] : memref<9x512xf32, #tpu.memory_space<vmem>>, vector<9x512xf32>
    tpu.vector_store %arg6[%c0_5, %c0_6], %5 {strides = array<i32>} : memref<9x512xf32, #tpu.memory_space<vmem>>, vector<9x512xf32>,
    %7 = vector.extract_strided_slice %5 {offsets = [0, 0], sizes = [5, 512], strides = [1, 1]} : vector<9x512xf32> to vector<5x512xf32>
    %c0_7 = arith.constant 0 : index
    %c0_8 = arith.constant 0 : index
    %8 = vector.load %arg3[%c0_7, %c0_8] : memref<1x512xi32, #tpu.memory_space<vmem>>, vector<1x512xi32>
    %cst_9 = arith.constant dense<0xFF800000> : vector<512xf32>
    %9 = vector.multi_reduction <maximumf>, %7, %cst_9 [0] : vector<5x512xf32> to vector<512xf32>
    %10 = vector.shape_cast %9 : vector<512xf32> to vector<1x512xf32>
    %11 = vector.broadcast %10 : vector<1x512xf32> to vector<5x512xf32>
    %12 = arith.subf %7, %11 : vector<5x512xf32>
    %13 = math.exp %12 : vector<5x512xf32>
    %cst_10 = arith.constant dense<0.000000e+00> : vector<512xf32>
    %14 = vector.multi_reduction <add>, %13, %cst_10 [0] : vector<5x512xf32> to vector<512xf32>
    %15 = vector.shape_cast %14 : vector<512xf32> to vector<1x512xf32>
    %16 = math.log %15 : vector<1x512xf32>
    %17 = arith.addf %16, %10 : vector<1x512xf32>
    %18 = tpu.iota {dimensions = array<i32: 0>} : vector<5x512xi32>
    %19 = vector.broadcast %8 : vector<1x512xi32> to vector<5x512xi32>
    %20 = arith.cmpi eq, %18, %19 : vector<5x512xi32>
    %cst_11 = arith.constant 0.000000e+00 : f32
    %21 = vector.broadcast %cst_11 : f32 to vector<5x512xf32>
    %22 = arith.select %20, %7, %21 : vector<5x512xi1>, vector<5x512xf32>
    %cst_12 = arith.constant dense<0.000000e+00> : vector<512xf32>
    %23 = vector.multi_reduction <add>, %22, %cst_12 [0] : vector<5x512xf32> to vector<512xf32>
    %24 = vector.shape_cast %23 : vector<512xf32> to vector<1x512xf32>
    %c255_i32 = arith.constant 255 : i32
    %25 = vector.broadcast %c255_i32 : i32 to vector<1x512xi32>
    %26 = arith.cmpi ne, %8, %25 : vector<1x512xi32>
    %27 = arith.extui %26 : vector<1x512xi1> to vector<1x512xi32>
    %28 = arith.sitofp %27 : vector<1x512xi32> to vector<1x512xf32>
    %29 = arith.subf %17, %24 : vector<1x512xf32>
    %30 = arith.mulf %29, %28 : vector<1x512xf32>
    %31 = vector.shape_cast %28 : vector<1x512xf32> to vector<1x1x512xf32>
    %cst_13 = arith.constant dense<0.000000e+00> : vector<1xf32>
    %32 = vector.multi_reduction <add>, %31, %cst_13 [1, 2] : vector<1x1x512xf32> to vector<1xf32>
    %33 = vector.shape_cast %32 : vector<1xf32> to vector<1x1x1xf32>
    %34 = vector.extract %33[0, 0, 0] : f32 from vector<1x1x1xf32>
    %35 = vector.shape_cast %30 : vector<1x512xf32> to vector<1x1x512xf32>
    %cst_14 = arith.constant dense<0.000000e+00> : vector<1xf32>
    %36 = vector.multi_reduction <add>, %35, %cst_14 [1, 2] : vector<1x1x512xf32> to vector<1xf32>
    %37 = vector.shape_cast %36 : vector<1xf32> to vector<1x1x1xf32>
    %38 = vector.extract %37[0, 0, 0] : f32 from vector<1x1x1xf32>
    %cst_15 = arith.constant 1.000000e+00 : f32
    %39 = arith.maximumf %34, %cst_15 : f32
    %40 = arith.divf %38, %39 : f32
    %41 = vector.extract_strided_slice %5 {offsets = [5, 0], sizes = [3, 512], strides = [1, 1]} : vector<9x512xf32> to vector<3x512xf32>
    %c0_16 = arith.constant 0 : index
    %c0_17 = arith.constant 0 : index
    %42 = vector.load %arg4[%c0_16, %c0_17] : memref<3x512xf32, #tpu.memory_space<vmem>>, vector<3x512xf32>
    %43 = arith.subf %41, %42 : vector<3x512xf32>
    %44 = arith.mulf %43, %43 : vector<3x512xf32>
    %45 = vector.shape_cast %44 : vector<3x512xf32> to vector<1x3x512xf32>
    %cst_18 = arith.constant dense<0.000000e+00> : vector<1xf32>
    %46 = vector.multi_reduction <add>, %45, %cst_18 [1, 2] : vector<1x3x512xf32> to vector<1xf32>
    %47 = vector.shape_cast %46 : vector<1xf32> to vector<1x1x1xf32>
    %48 = vector.extract %47[0, 0, 0] : f32 from vector<1x1x1xf32>
    %cst_19 = arith.constant 6.51041686E-4 : f32
    %49 = arith.mulf %48, %cst_19 : f32
    %50 = vector.extract_strided_slice %5 {offsets = [8, 0], sizes = [1, 512], strides = [1, 1]} : vector<9x512xf32> to vector<1x512xf32>
    %c0_20 = arith.constant 0 : index
    %c0_21 = arith.constant 0 : index
    %51 = vector.load %arg5[%c0_20, %c0_21] : memref<1x512xf32, #tpu.memory_space<vmem>>, vector<1x512xf32>
    %52 = arith.subf %50, %51 : vector<1x512xf32>
    %53 = arith.mulf %52, %52 : vector<1x512xf32>
    %54 = vector.shape_cast %53 : vector<1x512xf32> to vector<1x1x512xf32>
    %cst_22 = arith.constant dense<0.000000e+00> : vector<1xf32>
    %55 = vector.multi_reduction <add>, %54, %cst_22 [1, 2] : vector<1x1x512xf32> to vector<1xf32>
    %56 = vector.shape_cast %55 : vector<1xf32> to vector<1x1x1xf32>
    %57 = vector.extract %56[0, 0, 0] : f32 from vector<1x1x1xf32>
    %cst_23 = arith.constant 0.001953125 : f32
    %58 = arith.mulf %57, %cst_23 : f32
    %c0_24 = arith.constant 0 : index
    %59 = memref.load %arg7[%c0_24] : memref<3xf32, #tpu.memory_space<smem>>
    memref.store %40, %arg7[%c0_24] : memref<3xf32, #tpu.memory_space<smem>>
    %c1 = arith.constant 1 : index
    %60 = memref.load %arg7[%c1] : memref<3xf32, #tpu.memory_space<smem>>
    memref.store %49, %arg7[%c1] : memref<3xf32, #tpu.memory_space<smem>>
    %c2 = arith.constant 2 : index
    %61 = memref.load %arg7[%c2] : memref<3xf32, #tpu.memory_space<smem>>
    memref.store %58, %arg7[%c2] : memref<3xf32, #tpu.memory_space<smem>>
    return
  }
}

</mosaic_0001>

<bundles_post_ra>
// kernel: _full_model_core.1
= control target key start
LH: loop header
LB: loop body
LE: loop exit
PB: predicated region body
PF: predicated region fallthrough
CT: control target
= control target key end

     0   :  { %vm53_vm0 = vcmask 1043456   ;;  %v614_v4 = vmov 0.0   ;;  %vm46_vm1 = vcmask 31744   ;;  %v615_v6 = vmov 0   ;;  %s867_s0 = inlined_call_operand.vmem [shape: f32[4,512], index: 0, kind: input, shape index: {}]   ;;  %s868_s1 = inlined_call_operand.vmem [shape: f32[9,4], index: 1, kind: input, shape index: {}]   ;;  %s869_s2 = inlined_call_operand.vmem [shape: f32[9,1], index: 2, kind: input, shape index: {}]   ;;  %s870_s3 = inlined_call_operand.vmem [shape: s32[1,512], index: 3, kind: input, shape index: {}]   ;;  %s871_s4 = inlined_call_operand.vmem [shape: f32[3,512], index: 4, kind: input, shape index: {}]   ;;  %s872_s5 = inlined_call_operand.vmem [shape: f32[1,512], index: 5, kind: input, shape index: {}]   ;;  %s873_s6 = inlined_call_operand.vmem [shape: f32[9,512], index: 6, kind: output, shape index: {0}]   ;;  %s874_s7 = inlined_call_operand.vmem [shape: f32[3], index: 7, kind: output, shape index: {1}]  }
   0x1   :  { %v26_v0 = vld [vmem:[%s867_s0] sm:$0xff]  ;;  %v27_v1 = vld [vmem:[%s867_s0 + $0x8] sm:$0xff]  ;;  %126 = vmatprep.mubr.f32.mxu0 %v614_v4  ;;  %203 = vmatprep.mubr.f32.mxu1 %v614_v4 }
   0x2   :  { %v44_v2 = vcombine.high %v26_v0, %v26_v0  ;;  %v45_v3 = vcombine.high %v27_v1, %v27_v1  ;;  %v28_v5 = vld [vmem:[%s868_s1] sm:$0xff]  ;;  %577 = vset.pattern.permute.xlu0 %v615_v6 }
   0x3   :  { %13 = vsyncpa [#allocation3], 0  ;;  %v30_v7 = vld [vmem:[%s869_s2] sm:$0xff]  ;;  %v29_v8 = vld [vmem:[%s868_s1 + $0x8] sm:$0x1]  ;;  %v306_v10 = vlaneseq  ;;  %vm392_vm3 = vcmask 1040384  }
   0x4   :  { %554 = vmatprep.subr.msk.mxu0 %vm53_vm0, %v44_v2  ;;  %558 = vmatprep.subr.msk.mxu1 %vm53_vm0, %v45_v3  ;;  %v31_v9 = vld [vmem:[%s869_s2 + $0x8] sm:$0x1]  ;;  %v224_v12 = vld [vmem:[%s870_s3] sm:$0xf]  ;;  %vm225_vm8 = vcmask 1044480   ;;  %vm464_vm9 = vcmask 1042432  }
   0x5   :  { %555 = vmatpush1.msk.msra.mxu0 %vm53_vm0, %v26_v0  ;;  %559 = vmatpush1.msk.msra.mxu1 %vm53_vm0, %v27_v1  ;;  %v307_v11 = vshrl.u32 %v306_v10, 7  ;;  %vm360_vm2 = vcmp.ne.s32.totalorder %v224_v12, 255  ;;  %v430_v37 = vld [vmem:[%s871_s4] sm:$0x77]  ;;  %v737_v38 = vld [vmem:[%s871_s4 + $0x8] sm:$0x77] }
   0x6   :  { %556 = vmatmul.mubr.msk.f32.vlgmr.msra.gmra.mrb[0].mxu0 %vm46_vm1, %v28_v5  ;;  %560 = vmatmul.mubr.msk.f32.vlgmr.msra.gmra.mrb[0].mxu1 %vm46_vm1, %v28_v5  ;;  %v562_v16 = vsel %vm360_vm2, 1.0, %v614_v4  ;;  %v482_v40 = vld [vmem:[%s872_s5] sm:$0xf]  ;;  %v434_v41 = vcombine.high %v430_v37, %v430_v37  ;;  %v435_v42 = vcombine.high %v737_v38, %v737_v38  ;;  %v436_v47 = vrot.slane %v430_v37, 3  ;;  %s616_s8 = smov 1.0   ;;  %s543_s12 = sshll.u32 %s874_s7, 4  ;;  %s544_s12 = int_to_ptr.vmem [resolvable:$true] %s543_s12 }
   0x7   :  { %132 = vmatprep.mubr.f32.mxu0 %v614_v4  ;;  %209 = vmatprep.mubr.f32.mxu1 %v614_v4  ;;  %v683_v13 = vsub.s32 0, %v307_v11  ;;  %v685_v14 = vsub.s32 1, %v307_v11  ;;  %v687_v15 = vsub.s32 2, %v307_v11  ;;  %v698_v22 = vsub.s32 3, %v307_v11  ;;  %s600_s16 = scalar_lea.vmem %s544_s12, 16  ;;  %p605_p1 = scmp.lt.s32.totalorder %s544_s12, %s544_s12 }
   0x8   :  { %34 = vperm.xlu0 %577, %v30_v7   ;;  %v437_v52 = vrot.slane %v434_v41, 3  ;;  %v438_v53 = vrot.slane %v737_v38, 3  ;;  %v439_v57 = vrot.slane %v435_v42, 3  ;;  %p601_p0 = scmp.ne.s32.totalorder %s544_s12, %s600_s16  ;;  %p606_p2 = scmp.lt.s32.totalorder %s600_s16, %s600_s16 }
   0x9   :  { %v690_v17 = vrot.slane %v562_v16, %v683_v13  ;;  %v693_v18 = vrot.slane %v562_v16, %v685_v14  ;;  %v311_v19 = vrot.slane %v224_v12, %v683_v13  ;;  %v319_v20 = vrot.slane %v224_v12, %v687_v15 }
   0xa   :  { %557 = vmatmul.mubr.msk.f32.gmra.mrb[2].mxu0 %vm46_vm1, %v29_v8  ;;  %561 = vmatmul.mubr.msk.f32.gmra.mrb[2].mxu1 %vm46_vm1, %v29_v8  ;;  %v315_v21 = vrot.slane %v224_v12, %v685_v14  ;;  %v701_v23 = vrot.slane %v562_v16, %v687_v15  ;;  %v323_v29 = vrot.slane %v224_v12, %v698_v22  ;;  %p607_p3 = por %p606_p2, %p605_p1 }
   0xb   :  { %v393_v24 = vsel %vm392_vm3, %v690_v17, 0.0  ;;  %vm705_vm4 = vcmp.eq.s32.totalorder %v307_v11, %v311_v19  ;;  %vm709_vm5 = vcmp.eq.s32.totalorder %v307_v11, %v319_v20  ;;  %v394_v27 = vsel %vm392_vm3, %v693_v18, 0.0 }
   0xc   :  { %39 = vperm.xlu0 %577, %v31_v9   ;;  %vm715_vm6 = vcmp.eq.s32.totalorder %v307_v11, %v315_v21  ;;  %v721_v30 = vrot.slane %v562_v16, %v698_v22  ;;  %v395_v31 = vadd.f32 %v394_v27, %v393_v24  ;;  %v396_v32 = vsel %vm392_vm3, %v701_v23, 0.0  ;;  %p608_p4 = pnand %p607_p3, %p601_p0 }
   0xd   :  { %vm727_vm7 = vcmp.eq.s32.totalorder %v307_v11, %v323_v29  ;;  %v487_v45 = vrot.slane %v482_v40, %v683_v13  ;;  %v495_v46 = vrot.slane %v482_v40, %v687_v15  ;;  %v491_v56 = vrot.slane %v482_v40, %v685_v14 }
   0xe   :  { %v397_v33 = vadd.f32 %v396_v32, %v395_v31  ;;  %v398_v34 = vsel %vm392_vm3, %v721_v30, 0.0  ;;  %v499_v62 = vrot.slane %v482_v40, %v698_v22 }
  0x10   :  { %v399_v35 = vadd.f32 %v398_v34, %v397_v33 }
  0x12   :  { %400 = vadd.xlane.f32.xlu1 %v399_v35 }
  0x87   :  { %v35_v39 = vpop.permute.xlu0 %34 }
  0x8b   :  { %v40_v60 = vpop.permute.xlu0 %39 }
  0xd9   :  { %v128_v43 = vpop.f32.mrb[0].mxu0  ;;  %v205_v44 = vpop.f32.mrb[0].mxu1 }
  0xda   :  { %v746_v48 = vadd.f32 %v128_v43, %v35_v39  ;;  %v748_v49 = vadd.f32 %v205_v44, %v35_v39  ;;  %v130_v50 = vpop.f32.mrb[1].mxu0  ;;  %v207_v51 = vpop.f32.mrb[1].mxu1 }
  0xdb   :  { %v751_v54 = vadd.f32 %v130_v50, %v35_v39  ;;  %v753_v55 = vadd.f32 %v207_v51, %v35_v39 }
  0xdc   :  { %216 = vst [vmem:[%s873_s6] sm:$0xff] %v746_v48  ;;  %v226_v58 = vsel %vm225_vm8, %v746_v48, -inf  ;;  %218 = vst [vmem:[%s873_s6 + $0x10] sm:$0xff] %v748_v49  ;;  %v240_v59 = vsel %vm225_vm8, %v748_v49, -inf  ;;  %v328_v61 = vsel %vm705_vm4, %v746_v48, 0.0  ;;  %v444_v20 = vsub.f32 %v746_v48, %v436_v47 }
  0xdd   :  { %v227_v63 = vrot.slane %v226_v58, 4  ;;  %v241_v0 = vrot.slane %v240_v59, 4  ;;  %217 = vst [vmem:[%s873_s6 + $0x8] sm:$0xff] %v751_v54  ;;  %v233_v1 = vsel %vm225_vm8, %v751_v54, -inf  ;;  %219 = vst [vmem:[%s873_s6 + $0x18] sm:$0xff] %v753_v55  ;;  %v247_v2 = vsel %vm225_vm8, %v753_v55, -inf }
  0xde   :  { %v134_v3 = vpop.f32.mrb[2].mxu0  ;;  %v211_v4 = vpop.f32.mrb[2].mxu1  ;;  %v234_v5 = vrot.slane %v233_v1, 4  ;;  %v248_v6 = vrot.slane %v247_v2, 4  ;;  %v329_v14 = vsel %vm715_vm6, %v751_v54, 0.0  ;;  %v445_v31 = vsub.f32 %v751_v54, %v437_v52 }
  0xdf   :  { %v135_v7 = vadd.f32 %v134_v3, %v40_v60  ;;  %v212_v8 = vadd.f32 %v211_v4, %v40_v60  ;;  %v136_v9 = vpop.f32.mrb[3].mxu0  ;;  %v213_v10 = vpop.f32.mrb[3].mxu1  ;;  %v228_v11 = vmax.f32 %v226_v58, %v227_v63  ;;  %v242_v12 = vmax.f32 %v240_v59, %v241_v0 }
  0xe0   :  { %v137_v13 = vadd.f32 %v136_v9, %v40_v60  ;;  %v235_v15 = vmax.f32 %v233_v1, %v234_v5  ;;  %v214_v24 = vadd.f32 %v213_v10, %v40_v60  ;;  %v249_v29 = vmax.f32 %v247_v2, %v248_v6 }
  0xe1   :  { %220 = vst [vmem:[%s873_s6 + $0x20] sm:$0x1] %v135_v7  ;;  %v504_v16 = vsub.f32 %v135_v7, %v487_v45  ;;  %222 = vst [vmem:[%s873_s6 + $0x30] sm:$0x1] %v212_v8  ;;  %v506_v19 = vsub.f32 %v212_v8, %v495_v46  ;;  %v229_v21 = vrot.slane %v228_v11, 2  ;;  %v243_v33 = vrot.slane %v242_v12, 2 }
  0xe2   :  { %221 = vst [vmem:[%s873_s6 + $0x28] sm:$0x1] %v137_v13  ;;  %v505_v22 = vsub.f32 %v137_v13, %v491_v56  ;;  %v236_v27 = vrot.slane %v235_v15, 2  ;;  %223 = vst [vmem:[%s873_s6 + $0x38] sm:$0x1] %v214_v24  ;;  %v507_v34 = vsub.f32 %v214_v24, %v499_v62  ;;  %v446_v35 = vsub.f32 %v748_v49, %v438_v53 }
  0xe3   :  { %v230_v32 = vmax.f32 %v228_v11, %v229_v21  ;;  %v508_v38 = vmul.f32 %v504_v16, %v504_v16  ;;  %v447_v39 = vsub.f32 %v753_v55, %v439_v57  ;;  %v448_v40 = vmul.f32 %v444_v20, %v444_v20 }
  0xe4   :  { %v237_v37 = vmax.f32 %v235_v15, %v236_v27  ;;  %v510_v42 = vmul.f32 %v506_v19, %v506_v19  ;;  %v509_v43 = vmul.f32 %v505_v22, %v505_v22  ;;  %v449_v44 = vmul.f32 %v445_v31, %v445_v31 }
  0xe5   :  { %v231_v41 = vrot.slane %v230_v32, 1  ;;  %v450_v46 = vmul.f32 %v446_v35, %v446_v35  ;;  %v451_v47 = vmul.f32 %v447_v39, %v447_v39  ;;  %v456_v50 = vrot.slane %v448_v40, 5 }
  0xe6   :  { %v238_v45 = vrot.slane %v237_v37, 1  ;;  %v457_v52 = vrot.slane %v449_v44, 5  ;;  %v244_v56 = vmax.f32 %v242_v12, %v243_v33  ;;  %v250_v58 = vrot.slane %v249_v29, 2 }
  0xe7   :  { %v803_v51 = vmax.f32 %v230_v32, %v231_v41  ;;  %v458_v53 = vrot.slane %v450_v46, 5  ;;  %v459_v60 = vrot.slane %v451_v47, 5  ;;  %v465_v57 = vsel %vm464_vm9, %v456_v50, 0.0 }
  0xe8   :  { %v805_v59 = vmax.f32 %v237_v37, %v238_v45  ;;  %v466_v63 = vsel %vm464_vm9, %v457_v52, 0.0  ;;  %v245_v0 = vrot.slane %v244_v56, 1  ;;  %v251_v1 = vmax.f32 %v249_v29, %v250_v58 }
  0xe9   :  { %v254_v62 = vsub.f32 %v746_v48, %v803_v51  ;;  %v512_v3 = vsel %vm392_vm3, %v508_v38, 0.0  ;;  %v467_v4 = vadd.f32 %v466_v63, %v465_v57  ;;  %v468_v5 = vsel %vm464_vm9, %v458_v53, 0.0 }
  0xea   :  { %v255_v2 = vsub.f32 %v751_v54, %v805_v59  ;;  %v815_v7 = vmax.f32 %v244_v56, %v245_v0  ;;  %v252_v8 = vrot.slane %v251_v1, 1  ;;  %v330_v9 = vsel %vm709_vm5, %v748_v49, 0.0 }
  0xeb   :  { %v258_v6 = vmul.f32 1.442695, %v254_v62  ;;  %v513_v11 = vsel %vm392_vm3, %v509_v43, 0.0  ;;  %v469_v12 = vadd.f32 %v468_v5, %v467_v4  ;;  %v331_v13 = vsel %vm727_vm7, %v753_v55, 0.0 }
  0xec   :  { %v260_v10 = vmul.f32 1.442695, %v255_v2  ;;  %v470_v15 = vsel %vm464_vm9, %v459_v60, 0.0  ;;  %v825_v16 = vmax.f32 %v251_v1, %v252_v8  ;;  %v256_v19 = vsub.f32 %v748_v49, %v815_v7  ;;  %v401_v49 = vpop.xlane.xlu1 %400 }
  0xed   :  { %582 = vpow2.f32 %v258_v6  ;;  %v471_v20 = vadd.f32 %v470_v15, %v469_v12  ;;  %v511_v26 = vmul.f32 %v507_v34, %v507_v34  ;;  %v514_v24 = vadd.f32 %v513_v11, %v512_v3 }
  0xee   :  { %584 = vpow2.f32 %v260_v10  ;;  %v257_v21 = vsub.f32 %v753_v55, %v825_v16  ;;  %v262_v22 = vmul.f32 1.442695, %v256_v19  ;;  %v515_v27 = vsel %vm392_vm3, %v510_v42, 0.0 }
  0xef   :  { %472 = vadd.xlane.f32.xlu0 %v471_v20  ;;  %v516_v29 = vadd.f32 %v515_v27, %v514_v24  ;;  %v517_v31 = vsel %vm392_vm3, %v511_v26, 0.0  ;;  %v402_v37 = vrot.slane %v401_v49, 4  ;;  %v332_v42 = vsel %vm225_vm8, %v328_v61, 0.0 }
  0xf0   :  { %586 = vpow2.f32 %v262_v22  ;;  %v264_v36 = vmul.f32 1.442695, %v257_v21  ;;  %v339_v45 = vsel %vm225_vm8, %v329_v14, 0.0  ;;  %v333_v58 = vrot.slane %v332_v42, 4 }
  0xf1   :  { %v833_v32 = vadd.f32 %v517_v31, %v516_v29  ;;  %v403_v46 = vadd.f32 %v402_v37, %v401_v49  ;;  %v346_v48 = vsel %vm225_vm8, %v330_v9, 0.0  ;;  %v340_v57 = vrot.slane %v339_v45, 4 }
  0xf2   :  { %588 = vpow2.f32 %v264_v36  ;;  %v353_v14 = vsel %vm225_vm8, %v331_v13, 0.0  ;;  %v334_v2 = vadd.f32 %v333_v58, %v332_v42  ;;  %v347_v3 = vrot.slane %v346_v48, 4 }
  0xf3   :  { %v404_v28 = vrot.slane %v403_v46, 2  ;;  %v341_v8 = vadd.f32 %v340_v57, %v339_v45  ;;  %v354_v9 = vrot.slane %v353_v14, 4 }
  0xf4   :  { %v335_v19 = vrot.slane %v334_v2, 2  ;;  %v348_v20 = vadd.f32 %v347_v3, %v346_v48 }
  0xf5   :  { %v405_v11 = vadd.f32 %v404_v28, %v403_v46  ;;  %v342_v13 = vrot.slane %v341_v8, 2  ;;  %v355_v24 = vadd.f32 %v354_v9, %v353_v14 }
  0xf6   :  { %v336_v29 = vadd.f32 %v335_v19, %v334_v2  ;;  %v349_v31 = vrot.slane %v348_v20, 2 }
  0xf7   :  { %v583_v33 = vpop.eup %582  ;;  %v406_v26 = vrot.slane %v405_v11, 1  ;;  %v343_v49 = vadd.f32 %v342_v13, %v341_v8 }
  0xf8   :  { %v585_v35 = vpop.eup %584  ;;  %v266_v34 = vsel %vm225_vm8, %v583_v33, 0.0  ;;  %v356_v33 = vrot.slane %v355_v24, 2 }
  0xf9   :  { %v267_v55 = vrot.slane %v266_v34, 4  ;;  %v273_v38 = vsel %vm225_vm8, %v585_v35, 0.0  ;;  %v407_v36 = vadd.f32 %v406_v26, %v405_v11  ;;  %v337_v35 = vrot.slane %v336_v29, 1 }
  0xfa   :  { %v274_v39 = vrot.slane %v273_v38, 4  ;;  %v587_v40 = vpop.eup %586 }
  0xfb   :  { %v268_v41 = vadd.f32 %v267_v55, %v266_v34  ;;  %v280_v44 = vsel %vm225_vm8, %v587_v40, 0.0  ;;  %563 = vpush %v407_v36  ;;  %v350_v34 = vadd.f32 %v349_v31, %v348_v20  ;;  %v344_v55 = vrot.slane %v343_v49, 1 }
  0xfc   :  { %v275_v43 = vadd.f32 %v274_v39, %v273_v38  ;;  %v589_v47 = vpop.eup %588  ;;  %v281_v52 = vrot.slane %v280_v44, 4  ;;  %v357_v40 = vadd.f32 %v356_v33, %v355_v24 }
  0xfd   :  { %v269_v50 = vrot.slane %v268_v41, 2  ;;  %v287_v25 = vsel %vm225_vm8, %v589_v47, 0.0  ;;  %v345_v47 = vadd.f32 %v344_v55, %v343_v49 }
  0xfe   :  { %v276_v56 = vrot.slane %v275_v43, 2  ;;  %v282_v53 = vadd.f32 %v281_v52, %v280_v44  ;;  %v288_v60 = vrot.slane %v287_v25, 4  ;;  %v351_v44 = vrot.slane %v350_v34, 1 }
  0xff   :  { %v270_v61 = vadd.f32 %v269_v50, %v268_v41  ;;  %v358_v52 = vrot.slane %v357_v40, 1 }
 0x100   :  { %v277_v62 = vadd.f32 %v276_v56, %v275_v43  ;;  %v283_v54 = vrot.slane %v282_v53, 2  ;;  %v289_v0 = vadd.f32 %v288_v60, %v287_v25  ;;  %v338_v43 = vadd.f32 %v337_v35, %v336_v29 }
 0x101   :  { %v271_v63 = vrot.slane %v270_v61, 1 }
 0x102   :  { %v278_v1 = vrot.slane %v277_v62, 1  ;;  %v284_v5 = vadd.f32 %v283_v54, %v282_v53  ;;  %v290_v6 = vrot.slane %v289_v0, 2  ;;  %v352_v53 = vadd.f32 %v351_v44, %v350_v34 }
 0x103   :  { %v272_v4 = vadd.f32 %v271_v63, %v270_v61 }
 0x104   :  { %v279_v10 = vadd.f32 %v278_v1, %v277_v62  ;;  %v285_v12 = vrot.slane %v284_v5, 1  ;;  %v291_v15 = vadd.f32 %v290_v6, %v289_v0  ;;  %v359_v62 = vadd.f32 %v358_v52, %v357_v40 }
 0x105   :  { %590 = vlog2.f32 %v272_v4 }
 0x106   :  { %592 = vlog2.f32 %v279_v10  ;;  %v286_v21 = vadd.f32 %v285_v12, %v284_v5  ;;  %v292_v22 = vrot.slane %v291_v15, 1 }
 0x108   :  { %v293_v27 = vadd.f32 %v292_v22, %v291_v15  ;;  %594 = vlog2.f32 %v286_v21 }
 0x10a   :  { %596 = vlog2.f32 %v293_v27 }
 0x10f   :  { %v591_v37 = vpop.eup %590 }
 0x110   :  { %v593_v38 = vpop.eup %592  ;;  %v295_v39 = vmul.f32 0.6931472, %v591_v37 }
 0x111   :  { %v297_v41 = vmul.f32 0.6931472, %v593_v38 }
 0x112   :  { %v302_v42 = vadd.f32 %v295_v39, %v803_v51  ;;  %v595_v45 = vpop.eup %594 }
 0x113   :  { %v303_v46 = vadd.f32 %v297_v41, %v805_v59  ;;  %v299_v50 = vmul.f32 0.6931472, %v595_v45 }
 0x114   :  { %v363_v56 = vsub.f32 %v302_v42, %v338_v43  ;;  %v597_v25 = vpop.eup %596 }
 0x115   :  { %v364_v58 = vsub.f32 %v303_v46, %v345_v47  ;;  %v301_v48 = vmul.f32 0.6931472, %v597_v25  ;;  %v304_v61 = vadd.f32 %v299_v50, %v815_v7 }
 0x116   :  { %v388_v60 = vmul.f32 %v690_v17, %v363_v56 }
 0x117   :  { %v389_v57 = vmul.f32 %v693_v18, %v364_v58  ;;  %v305_v51 = vadd.f32 %v301_v48, %v825_v16  ;;  %v365_v28 = vsub.f32 %v304_v61, %v352_v53 }
 0x118   :  { %v409_v59 = vsel %vm392_vm3, %v388_v60, 0.0 }
 0x119   :  { %v410_v63 = vsel %vm392_vm3, %v389_v57, 0.0  ;;  %v366_v54 = vsub.f32 %v305_v51, %v359_v62  ;;  %v390_v0 = vmul.f32 %v701_v23, %v365_v28 }
 0x11a   :  { %v411_v14 = vadd.f32 %v410_v63, %v409_v59 }
 0x11b   :  { %v391_v1 = vmul.f32 %v721_v30, %v366_v54  ;;  %v412_v7 = vsel %vm392_vm3, %v390_v0, 0.0 }
 0x11c   :  { %v413_v2 = vadd.f32 %v412_v7, %v411_v14 }
 0x11d   :  { %v414_v17 = vsel %vm392_vm3, %v391_v1, 0.0 }
 0x11e   :  { %v415_v18 = vadd.f32 %v414_v17, %v413_v2 }
 0x120   :  { %416 = vadd.xlane.f32.xlu1 %v415_v18 }
 0x124   :  { %519 = vadd.xlane.f32.xlu1 %v833_v32 }
 0x12c   :  { %s564_s6 = spop %563 }
 0x12d   :  { %s425_s0 = smax.f32 %s616_s8, %s564_s6 }
 0x12e   :  { %v426_v5 = vstv %s425_s0 }
 0x12f   :  { %598 = vrcp.f32 %v426_v5 }
 0x139   :  { %v599_v13 = vpop.eup %598 }
 0x17c   :  { %v473_v16 = vpop.xlane.xlu0 %472 }
 0x17d   :  { %v474_v3 = vrot.slane %v473_v16, 4 }
 0x17f   :  { %v475_v4 = vadd.f32 %v474_v3, %v473_v16 }
 0x181   :  { %v476_v6 = vrot.slane %v475_v4, 2 }
 0x183   :  { %v477_v9 = vadd.f32 %v476_v6, %v475_v4 }
 0x185   :  { %v478_v26 = vrot.slane %v477_v9, 1 }
 0x187   :  { %v479_v24 = vadd.f32 %v478_v26, %v477_v9 }
 0x1ad   :  { %v417_v23 = vpop.xlane.xlu1 %416 }
 0x1ae   :  { %v418_v8 = vrot.slane %v417_v23, 4 }
 0x1b0   :  { %v419_v30 = vadd.f32 %v418_v8, %v417_v23 }
 0x1b1   :  { %v520_v10 = vpop.xlane.xlu1 %519 }
 0x1b2   :  { %v420_v11 = vrot.slane %v419_v30, 2  ;;  %v521_v12 = vrot.slane %v520_v10, 4 }
 0x1b4   :  { %v522_v15 = vadd.f32 %v521_v12, %v520_v10  ;;  %v421_v19 = vadd.f32 %v420_v11, %v419_v30 }
 0x1b6   :  { %v523_v20 = vrot.slane %v522_v15, 2  ;;  %v422_v32 = vrot.slane %v421_v19, 1 }
 0x1b8   :  { %v524_v21 = vadd.f32 %v523_v20, %v522_v15  ;;  %v423_v22 = vadd.f32 %v422_v32, %v421_v19 }
 0x1ba   :  { %565 = vpush %v423_v22  ;;  %v525_v36 = vrot.slane %v524_v21, 1 }
 0x1bb   :  { %567 = vpush %v599_v13 }
 0x1bc   :  { %569 = vpush %v479_v24  ;;  %v526_v27 = vadd.f32 %v525_v36, %v524_v21 }
 0x1be   :  { %571 = vpush %v526_v27 }
 0x1eb   :  { %s566_s9 = spop %565 }
 0x1ec   :  { %s568_s13 = spop %567 }
 0x1ed   :  { %s429_s1 = smul.f32 %s568_s13, %s566_s9  ;;  %s570_s2 = spop %569 }
 0x1ee   :  { %s481_s3 = smul.f32 0.0006510417, %s570_s2 }
 0x1ef   :  { %530 = sst [smem:[#allocation2]] %s429_s1  ;;  %s572_s14 = spop %571 }
 0x1f0   :  { %532 = sst [smem:[#allocation2 + $0x1]] %s481_s3  ;;  %s528_s15 = smul.f32 0.001953125, %s572_s14 }
 0x1f2   :  { %534 = sst [smem:[#allocation2 + $0x2]] %s528_s15 }
 0x1f3   :  { %611 = shalt.err (!%p608_p4)
}
 0x1f4   :  { %s617_s4 = smov [#allocation2]  }
 0x1f5   :  { %546 = dma.smem_to_vmem %s617_s4, 16, %s544_s12, [#allocation3]  }
 0x1f6   :  { %612 = dma.done.wait [#allocation3], 16  }
 0x1f7   :  { %613 = vsyncadd [#allocation3], 4294967280 }
 0x1f8   :  { %552 = sfence }
 0x1f9   :  { %553 = vsyncpa [#allocation3], 1 }

</bundles_post_ra>
